<compile_context>
chip_gen: v7x
topology: tpu7x:2x2x1
jax: 0.10.0
libtpu: 0.0.40
codegen_flags: <defaults>
</compile_context>

<pallas_src>
import functools
import math

import jax
import jax.numpy as jnp
from jax.experimental import pallas as pl
from jax.experimental.pallas import tpu as pltpu


def _mean_nodes_kernel(x_ref, o_ref, acc_ref, *, inv_n):
    # x_ref  : (1, TILE_N, TILE_D)   input tile
    # o_ref  : (1, 1, TILE_D)        output tile (written on last node step)
    # acc_ref: (1, TILE_D) f32       running sum over the node axis
    k = pl.program_id(2)

    @pl.when(k == 0)
    def _():
        acc_ref[...] = jnp.zeros_like(acc_ref)

    acc_ref[...] += jnp.sum(x_ref[...], axis=1, dtype=jnp.float32)

    @pl.when(k == pl.num_programs(2) - 1)
    def _():
        o_ref[0] = (acc_ref[...] * inv_n).astype(o_ref.dtype)


def _round_up(v, m):
    return (v + m - 1) // m * m


def _mean_over_nodes(x3):
    """x3: (B, N, D) -> (B, D), mean over axis 1, via a tiled Pallas kernel."""
    B, N, D = x3.shape
    dtype = x3.dtype

    # Lane-dense feature tiles (multiple of 128), sublane-aligned node tiles.
    D_pad = _round_up(D, 128)
    TILE_D = min(512, D_pad)
    while D_pad % TILE_D != 0:
        TILE_D -= 128            # terminates at 128 since D_pad % 128 == 0

    TILE_N = min(_round_up(N, 8), 512)
    N_pad = _round_up(N, TILE_N)

    if (N_pad, D_pad) != (N, D):
        # Zero padding: contributes nothing to the sum; divide by true N.
        x3 = jnp.pad(x3, ((0, 0), (0, N_pad - N), (0, D_pad - D)))

    grid = (B, D_pad // TILE_D, N_pad // TILE_N)

    out = pl.pallas_call(
        functools.partial(_mean_nodes_kernel, inv_n=1.0 / float(N)),
        out_shape=jax.ShapeDtypeStruct((B, 1, D_pad), dtype),
        grid_spec=pltpu.PrefetchScalarGridSpec(
            num_scalar_prefetch=0,
            grid=grid,
            in_specs=[
                pl.BlockSpec((1, TILE_N, TILE_D), lambda b, j, k: (b, k, j)),
            ],
            out_specs=pl.BlockSpec((1, 1, TILE_D), lambda b, j, k: (b, 0, j)),
            scratch_shapes=[pltpu.VMEM((1, TILE_D), jnp.float32)],
        ),
        compiler_params=pltpu.CompilerParams(
            dimension_semantics=("parallel", "parallel", "arbitrary")),
    )(x3)

    out = out[:, 0, :]
    if D_pad != D:
        out = out[:, :D]
    return out


def module_mean_readout_forward(x, node_axis=1):
    """Replicates ModuleMeanReadout.forward.

    Returns (x.mean(node_axis), zeros((1, 1, 1), float32)).
    Works for any x with ndim >= 2; the last remaining axis is kept on lanes.
    """
    nd = x.ndim
    axis = node_axis % nd
    # Move the node axis to second-to-last so features sit on the lane axis.
    if axis != nd - 2:
        x = jnp.moveaxis(x, axis, -2)
    lead = x.shape[:-2]
    N, D = x.shape[-2], x.shape[-1]
    B = math.prod(lead) if lead else 1

    out3 = _mean_over_nodes(x.reshape(B, N, D))
    out = out3.reshape(*lead, D)

    attention = jnp.zeros((1, 1, 1), jnp.float32)  # constant placeholder
    return out, attention


if __name__ == "__main__":
    key = jax.random.PRNGKey(0)

    # (batch=2, nodes=8, hidden=128): lane-dense feature dim.
    x = jax.random.normal(key, (2, 8, 128), dtype=jnp.float32)
    y, attn = module_mean_readout_forward(x, node_axis=1)
    jax.block_until_ready(y)
    y_ref = jnp.mean(x, axis=1)
    assert y.shape == y_ref.shape
    assert jnp.allclose(y, y_ref, atol=1e-5, rtol=1e-5)
    assert attn.shape == (1, 1, 1)
    assert jnp.all(attn == 0.0)

    # Non-multiple shapes exercising the zero-padding path (nodes=5, hidden=32).
    x2 = jax.random.normal(jax.random.PRNGKey(0), (2, 5, 32), dtype=jnp.float32)
    y2, _ = module_mean_readout_forward(x2, node_axis=1)
    jax.block_until_ready(y2)
    assert jnp.allclose(y2, jnp.mean(x2, axis=1), atol=1e-5, rtol=1e-5)

    # 4-D input (e.g. (time, batch, nodes, hidden)) with node_axis != 1.
    x3 = jax.random.normal(jax.random.PRNGKey(0), (3, 2, 8, 128),
                           dtype=jnp.float32)
    y3, _ = module_mean_readout_forward(x3, node_axis=2)
    jax.block_until_ready(y3)
    assert jnp.allclose(y3, jnp.mean(x3, axis=2), atol=1e-5, rtol=1e-5)

    print("KERNEL_OK")
</pallas_src>

<mosaic_0001>
module attributes {stable_mosaic.version = 11 : i64} {
  func.func @_mean_nodes_kernel(%arg0: i32, %arg1: i32, %arg2: i32, %arg3: memref<1x8x128xf32, #tpu.memory_space<vmem>>, %arg4: memref<1x1x128xf32, #tpu.memory_space<vmem>>, %arg5: memref<1x128xf32, #tpu.memory_space<vmem>>) attributes {dimension_semantics = [#tpu.dimension_semantics<parallel>, #tpu.dimension_semantics<parallel>, #tpu.dimension_semantics<arbitrary>], iteration_bounds = array<i64: 2, 1, 1>, scalar_prefetch = 0 : i64, scratch_operands = 1 : i64, tpu.core_type = #tpu.core_type<tc>, window_params = [{transform_indices = @transform_0, window_bounds = array<i64: 1, 8, 128>}, {transform_indices = @transform_1, window_bounds = array<i64: 1, 1, 128>}]} {
    %c0_i32 = arith.constant 0 : i32
    %0 = arith.cmpi eq, %arg2, %c0_i32 : i32
    %1 = arith.extui %0 : i1 to i32
    %c0_i32_0 = arith.constant 0 : i32
    %2 = arith.cmpi ne, %1, %c0_i32_0 : i32
    scf.if %2 {
      %cst_9 = arith.constant 0.000000e+00 : f32
      %11 = vector.broadcast %cst_9 : f32 to vector<1x128xf32>
      %c0_10 = arith.constant 0 : index
      %c0_11 = arith.constant 0 : index
      %12 = vector.load %arg5[%c0_10, %c0_11] : memref<1x128xf32, #tpu.memory_space<vmem>>, vector<1x128xf32>
      tpu.vector_store %arg5[%c0_10, %c0_11], %11 {strides = array<i32>} : memref<1x128xf32, #tpu.memory_space<vmem>>, vector<1x128xf32>,
    } else {
    }
    %c0 = arith.constant 0 : index
    %c0_1 = arith.constant 0 : index
    %3 = vector.load %arg5[%c0, %c0_1] : memref<1x128xf32, #tpu.memory_space<vmem>>, vector<1x128xf32>
    %c0_2 = arith.constant 0 : index
    %c0_3 = arith.constant 0 : index
    %c0_4 = arith.constant 0 : index
    %4 = vector.load %arg3[%c0_2, %c0_3, %c0_4] : memref<1x8x128xf32, #tpu.memory_space<vmem>>, vector<1x8x128xf32>
    %cst = arith.constant dense<0.000000e+00> : vector<1x128xf32>
    %5 = vector.multi_reduction <add>, %4, %cst [1] : vector<1x8x128xf32> to vector<1x128xf32>
    %6 = arith.addf %3, %5 : vector<1x128xf32>
    %c0_5 = arith.constant 0 : index
    %c0_6 = arith.constant 0 : index
    %7 = vector.load %arg5[%c0_5, %c0_6] : memref<1x128xf32, #tpu.memory_space<vmem>>, vector<1x128xf32>
    tpu.vector_store %arg5[%c0_5, %c0_6], %6 {strides = array<i32>} : memref<1x128xf32, #tpu.memory_space<vmem>>, vector<1x128xf32>,
    %c0_i32_7 = arith.constant 0 : i32
    %8 = arith.cmpi eq, %arg2, %c0_i32_7 : i32
    %9 = arith.extui %8 : i1 to i32
    %c0_i32_8 = arith.constant 0 : i32
    %10 = arith.cmpi ne, %9, %c0_i32_8 : i32
    scf.if %10 {
      %c0_9 = arith.constant 0 : index
      %c0_10 = arith.constant 0 : index
      %11 = vector.load %arg5[%c0_9, %c0_10] : memref<1x128xf32, #tpu.memory_space<vmem>>, vector<1x128xf32>
      %cst_11 = arith.constant 1.250000e-01 : f32
      %12 = vector.broadcast %cst_11 : f32 to vector<1x128xf32>
      %13 = arith.mulf %11, %12 : vector<1x128xf32>
      %c0_12 = arith.constant 0 : index
      %c0_13 = arith.constant 0 : index
      %c0_14 = arith.constant 0 : index
      %14 = vector.load %arg4[%c0_12, %c0_13, %c0_14] : memref<1x1x128xf32, #tpu.memory_space<vmem>>, vector<1x1x128xf32>
      %15 = vector.shape_cast %14 : vector<1x1x128xf32> to vector<1x128xf32>
      %16 = vector.shape_cast %13 : vector<1x128xf32> to vector<1x1x128xf32>
      tpu.vector_store %arg4[%c0_12, %c0_13, %c0_14], %16 {strides = array<i32>} : memref<1x1x128xf32, #tpu.memory_space<vmem>>, vector<1x1x128xf32>,
    } else {
    }
    return
  }
  func.func @transform_0(%arg0: i32, %arg1: i32, %arg2: i32) -> (i32, i32, i32) {
    %c0_i32 = arith.constant 0 : i32
    return %arg0, %arg2, %arg1 : i32, i32, i32
  }
  func.func @transform_1(%arg0: i32, %arg1: i32, %arg2: i32) -> (i32, i32, i32) {
    %c0_i32 = arith.constant 0 : i32
    %c0_i32_0 = arith.constant 0 : i32
    return %arg0, %c0_i32, %arg1 : i32, i32, i32
  }
}

</mosaic_0001>

<bundles_post_ra>
// kernel: tpu_custom_call.1
= control target key start
LH: loop header
LB: loop body
LE: loop exit
PB: predicated region body
PF: predicated region fallthrough
CT: control target
= control target key end

     0   :  { %6 = vsyncpa [#allocation4], 0  ;;  %s647_s0 = inlined_call_operand.hbm [shape: f32[2,8,128], index: 0, kind: input, shape index: {}]   ;;  %s648_s1 = inlined_call_operand.hbm [shape: f32[2,1,128], index: 1, kind: output, shape index: {}]  }
   0x1   :  { %8 = vsyncpa [#allocation4 + $0x1], 0 }
   0x2   :  { %9 = vsyncpa [#allocation5], 0 }
   0x3   :  { %11 = vsyncpa [#allocation5 + $0x1], 0  ;;  %s474_s6 = smov 0   ;;  %s476_s7 = smov 0  }
   0x4   :  { %s478_s8 = smov 0   ;;  %s480_s9 = smov 0  }
   0x5   :  { %s482_s10 = smov 0   ;;  %s484_s11 = smov 0  }
   0x6 LB: > { %s273_s12 = sadd.s32 4294967295, %s459_s11   ;;  %s274_s13 = sadd.s32 4294967294, %s459_s11   ;;  %s459_s11 = sphi %s484_s11, %s17_s11   ;;  %s455_s10 = sphi %s482_s10, %s664_s10   ;;  %s451_s9 = sphi %s480_s9, %s663_s9   ;;  %s447_s8 = sphi %s478_s8, %s662_s8   ;;  %s443_s7 = sphi %s476_s7, %s661_s7   ;;  %s439_s6 = sphi %s474_s6, %s660_s6  }
   0x7   : > { %s36_s14 = sadd.s32 1, %s455_s10  ;;  %s47_s15 = sadd.s32 1, %s447_s8 }
   0x8   : > { %p38_p0 = scmp.ge.s32.totalorder %s36_s14, 2  ;;  %p54_p1 = scmp.ne.s32.totalorder %s447_s8, %s443_s7 }
   0x9   : > { %p55_p2 = scmp.eq.s32.totalorder %s459_s11, 0  ;;  %p60_p3 = scmp.ne.s32.totalorder %s443_s7, %s439_s6 }
   0xa   : > { %s666_s14 = smov (%p38_p0, %s36_s14), 0  ;;  %p61_p5 = scmp.eq.s32.totalorder %s273_s12, 0 }
   0xb   : > { %p515_p4 = por %p55_p2, %p54_p1  ;;  %s40_s17 = ssub.s32 %s455_s10, %s666_s14 }
   0xc   : > { %p86_p6 = scmp.eq.s32.totalorder %s273_s12, 1  ;;  %p45_p7 = scmp.eq.s32.totalorder %s40_s17, 0 }
   0xd   : > { %p521_p8 = por %p61_p5, %p60_p3  ;;  %p92_p10 = scmp.eq.s32.totalorder %s274_s13, 1 }
   0xe   : > { %p525_p9 = por %p86_p6, %p54_p1  ;;  %p296_p13 = scmp.lt.s32.totalorder %s459_s11, 2 }
   0xf   : > { %s530_s20 = scalar_select %p45_p7, %s447_s8, %s47_s15  }
  0x10   : > { %s652_s19 = scalar_select %p525_p9, 1, 0 }
  0x11   : > { %p532_p11 = por %p92_p10, %p60_p3  ;;  %s112_s22 = sand.u32 1, %s447_s8  }
  0x12   : > { %s277_s23 = sshll.u32 %s112_s22, 3  ;;  %s278_s24 = sshll.u32 %s455_s10, 7 }
  0x13   : > { %s653_s21 = scalar_select %p532_p11, 1, 0 }
  0x14   : > { %s543_s27 = scalar_lea.hbm %s647_s0, %s278_s24  ;;  %s116_s28 = scalar_lea.vmem [#allocation3], %s277_s23 }
  0x15   : > { %s125_s29 = sshll.u32 %s116_s28, 4  ;;  %p549_p0 = pnand %p296_p13, %p515_p4  ;;  %s545_s29 = int_to_ptr.vmem [resolvable:$true] %s125_s29 }
  0x16   : > { %s113_s2 = scalar_lea.sflag [#allocation4], %s112_s22  ;;  %s347_s3 = scalar_lea.hbm %s543_s27, 128 }
  0x17   : > { %p348_p3 = scmp.ne.s32.totalorder %s543_s27, %s347_s3  ;;  %p349_p5 = pneg %p549_p0 }
  0x18   : > { %s352_s12 = scalar_lea.hbm %s647_s0, 256  ;;  %p353_p4 = scmp.lt.u32.totalorder %s543_s27, %s647_s0 }
  0x19   : > { %p350_p6 = pnand %p349_p5, %p348_p3  ;;  %p354_p10 = scmp.lt.u32.totalorder %s352_s12, %s347_s3 }
  0x1a   : > { %p356_p12 = scmp.lt.u32.totalorder %s347_s3, %s543_s27 }
  0x1b   : > { %p351_p7 = pneg %p350_p6  ;;  %p355_p13 = por %p354_p10, %p353_p4 }
  0x1d   : > { %p357_p1 = por %p356_p12, %p355_p13 }
  0x1f   : > { %p358_p2 = pnand %p357_p1, %p351_p7 }
  0x21   : > { %361 = shalt.err (!%p358_p2)
}
  0x22   : > { %s362_s16 = scalar_lea.vmem %s545_s29, 128  ;;  %s461_s17 = smov [#allocation3]  }
  0x23   : > { %p363_p3 = scmp.ne.s32.totalorder %s545_s29, %s362_s16  ;;  %s367_s22 = sshll.u32 %s461_s17, 4  ;;  %s368_s22 = int_to_ptr.vmem [resolvable:$false] %s367_s22 }
  0x24   : > { %s369_s23 = scalar_lea.vmem %s368_s22, 256  ;;  %p370_p9 = scmp.lt.s32.totalorder %s545_s29, %s368_s22 }
  0x25   : > { %p365_p6 = pnand %p363_p3, %p349_p5  ;;  %p371_p4 = scmp.lt.s32.totalorder %s369_s23, %s362_s16 }
  0x27   : > { %p366_p11 = pneg %p365_p6  ;;  %p372_p10 = por %p371_p4, %p370_p9 }
  0x29   : > { %p373_p12 = pnand %p372_p10, %p366_p11 }
  0x2b   : > { %376 = shalt.err (!%p373_p12)
}
  0x2c   : > { %291 = dma.hbm_to_vmem [thread:$0]  (!%p549_p0), %s543_s27, 128, %s545_s29, %s113_s2  }
  0x2d   : > { %p655_p1 = scmp.lt.s32.totalorder %s459_s11, 3  ;;  %p656_p2 = scmp.ge.s32.totalorder %s459_s11, 1 }
  0x2f   : > { %p131_p5 = pnand %p656_p2, %p655_p1 }
  0x30   : > { %s585_s24 = sand.u32 (!%p131_p5), 1, %s443_s7  }
  0x31   : > { %134 = sbr.rel (%p131_p5) target bundleno = 96 (0x60), region = 24  ;;  %s280_s25 = sshll.u32 (!%p131_p5), %s585_s24, 3 }
  0x32   : > { %s137_s26 = scalar_lea.sflag (!%p131_p5), [#allocation4], %s585_s24  ;;  %s140_s28 = scalar_lea.vmem (!%p131_p5), [#allocation3], %s280_s25 }
  0x38   : > { %430 = dma.done.wait (%p521_p8), %s137_s26, 128  }
  0x39   : > { %432 = vsyncadd (%p521_p8), %s137_s26, 4294967168  ;;  %v462_v0 = vmov 0.0   ;;  %v164_v1 = vld [vmem:[%s140_s28] sm:$0xff]  ;;  %s157_s27 = scalar_lea.vmem [#allocation6], %s585_s24  ;;  %s281_s18 = sshll.u32 %s451_s9, 4 }
  0x3a   : > { %162 = vst [vmem:[#allocation2] sm:$0x1] %v462_v0  ;;  %v165_v2 = vrot.slane %v164_v1, 4  ;;  %s193_s29 = sshll.u32 %s157_s27, 4  ;;  %s600_s3 = scalar_lea.hbm %s648_s1, %s281_s18  ;;  %s595_s29 = int_to_ptr.vmem [resolvable:$true] %s193_s29 }
  0x3b   : > { %s180_s4 = scalar_lea.sflag [#allocation5], %s585_s24  ;;  %s377_s5 = scalar_lea.vmem %s595_s29, 16 }
  0x3c   : > { %v166_v3 = vadd.f32 %v165_v2, %v164_v1  ;;  %p378_p8 = scmp.ne.s32.totalorder %s595_s29, %s377_s5  ;;  %p657_p9 = scmp.ne.s32.totalorder %s652_s19, 0 }
  0x3d   : > { %s463_s9 = smov [#allocation6]  }
  0x3e   : > { %v167_v4 = vrot.slane %v166_v3, 2  ;;  %p379_p11 = pnand %p378_p8, %p657_p9  ;;  %s381_s12 = sshll.u32 %s463_s9, 4  ;;  %s382_s12 = int_to_ptr.vmem [resolvable:$false] %s381_s12 }
  0x3f   : > { %s383_s13 = scalar_lea.vmem %s382_s12, 32  ;;  %p384_p7 = scmp.lt.s32.totalorder %s595_s29, %s382_s12 }
  0x40   : > { %v168_v5 = vadd.f32 %v167_v4, %v166_v3  ;;  %p380_p0 = pneg %p379_p11  ;;  %p385_p13 = scmp.lt.s32.totalorder %s383_s13, %s377_s5 }
  0x41   : > { %v163_v7 = vld [vmem:[#allocation2] sm:$0x1] }
  0x42   : > { %v169_v6 = vrot.slane %v168_v5, 1  ;;  %p386_p3 = por %p385_p13, %p384_p7 }
  0x44   : > { %v170_v8 = vadd.f32 %v169_v6, %v168_v5  ;;  %p387_p6 = pnand %p386_p3, %p380_p0 }
  0x46   : > { %v171_v9 = vadd.f32 %v170_v8, %v163_v7 }
  0x48   : > { %172 = vst [vmem:[#allocation2] sm:$0x1] %v171_v9 }
  0x4f   : > { %v176_v10 = vld [vmem:[#allocation2] sm:$0x1] }
  0x50   : > { %v177_v11 = vmul.f32 0.125, %v176_v10 }
  0x52   : > { %178 = vst [vmem:[%s157_s27] sm:$0x1] %v177_v11 }
  0x53   : > { %390 = shalt.err (!%p387_p6)
}
  0x54   : > { %s391_s15 = scalar_lea.hbm %s600_s3, 16  ;;  %s395_s22 = scalar_lea.hbm %s648_s1, 32 }
  0x55   : > { %p392_p4 = scmp.ne.s32.totalorder %s600_s3, %s391_s15  ;;  %p396_p1 = scmp.lt.u32.totalorder %s600_s3, %s648_s1 }
  0x56   : > { %p397_p2 = scmp.lt.u32.totalorder %s395_s22, %s391_s15  ;;  %p399_p8 = scmp.lt.u32.totalorder %s391_s15, %s600_s3 }
  0x57   : > { %p393_p10 = pnand %p392_p4, %p657_p9 }
  0x58   : > { %p398_p5 = por %p397_p2, %p396_p1 }
  0x59   : > { %p394_p12 = pneg %p393_p10 }
  0x5a   : > { %p400_p11 = por %p399_p8, %p398_p5 }
  0x5c   : > { %p401_p0 = pnand %p400_p11, %p394_p12 }
  0x5e   : > { %404 = shalt.err (!%p401_p0)
}
  0x5f   : > { %286 = dma.vmem_to_hbm [thread:$0]  (%p657_p9), %s595_s29, 16, %s600_s3, %s180_s4  }
  0x60 PF: > { %s205_s25 = sand.u32 1, %s439_s6   ;;  %p658_p7 = scmp.ne.s32.totalorder %s653_s21, 0 }
  0x61   : > { %p659_p13 = scmp.ge.s32.totalorder %s459_s11, 2  ;;  %s206_s26 = scalar_lea.sflag [#allocation5], %s205_s25 }
  0x63   : > { %p293_p3 = pnand %p659_p13, %p658_p7 }
  0x65   : > { %434 = dma.done.wait (!%p293_p3), %s206_s26, 16  }
  0x66   : > { %436 = vsyncadd (!%p293_p3), %s206_s26, 4294967280  ;;  %s17_s11 = sadd.s32 1, %s459_s11   ;;  %s660_s6 = smov %s443_s7 }
  0x67   : > { %p14_p6 = scmp.ge.s32.totalorder %s17_s11, 4   ;;  %s661_s7 = smov %s447_s8 }
  0x68   : > { %s662_s8 = smov %s530_s20  ;;  %s663_s9 = smov %s455_s10 }
  0x69   : > { %s664_s10 = smov %s666_s14  ;;  %16 = sbr.rel (!%p14_p6) target bundleno = 6 (0x6), region = 77 }
  0x70   :  { %210 = vsyncpa [#allocation4], 1 }
  0x71   :  { %212 = vsyncpa [#allocation4 + $0x1], 1 }
  0x72   :  { %213 = vsyncpa [#allocation5], 1 }
  0x73   :  { %215 = vsyncpa [#allocation5 + $0x1], 1 }

</bundles_post_ra>
